<compile_context>
chip_gen: v6e
topology: v6e:2x2x1
jax: 0.10.0
libtpu: 0.0.40
codegen_flags: <defaults>
</compile_context>

<pallas_src>
import functools
import math

import jax
import jax.numpy as jnp
from jax import lax
from jax.experimental import pallas as pl
from jax.experimental.pallas import tpu as pltpu


# ----------------------------------------------------------------------------
# Generation-aware budgets / tiling helpers
# ----------------------------------------------------------------------------

def _vmem_budget():
    """(vmem_limit_bytes, small_vmem?) -- 64 MiB scoped budget on v5e/v6e
    (128 MiB physical), 32 MiB on v7x-class parts (64 MiB physical)."""
    try:
        phys = int(pltpu.get_tpu_info().vmem_capacity_bytes)
    except Exception:                       # detection unavailable -> conservative
        return 32 * 1024 * 1024, True
    return min(64 * 1024 * 1024, phys // 2), phys <= 64 * 1024 * 1024


_VMEM_LIMIT, _SMALL_VMEM = _vmem_budget()

_LIN_TM = 256
_LIN_TN = 512 if _SMALL_VMEM else 1024
_LIN_TK = 512
_FFN_TM = 128 if _SMALL_VMEM else 256
_FFN_TH = 256 if _SMALL_VMEM else 512
_ATTN_TQ = 256
_ATTN_TK = 512


def _tile(dim, pref, align):
    """Largest `align`-aligned tile <= pref that divides `dim`.
    Falls back to the full dim only when dim <= pref or dim has no aligned
    divisor at all (small / odd shapes) -- never to a huge un-tiled dimension
    at real model sizes (e.g. vocab=32000 -> 640, hidden=11008 -> 256)."""
    if dim <= pref:
        return dim
    t = (pref // align) * align
    while t >= align:
        if dim % t == 0:
            return t
        t -= align
    return dim


# ----------------------------------------------------------------------------
# Projection kernels (bf16 MXU operands, f32 accumulation)
# ----------------------------------------------------------------------------

def _matmul_kernel(x_ref, w_ref, o_ref, acc_ref):
    @pl.when(pl.program_id(2) == 0)
    def _():
        acc_ref[...] = jnp.zeros_like(acc_ref)

    acc_ref[...] += jnp.dot(x_ref[...].astype(jnp.bfloat16), w_ref[...],
                            preferred_element_type=jnp.float32)

    @pl.when(pl.program_id(2) == pl.num_programs(2) - 1)
    def _():
        o_ref[...] = acc_ref[...].astype(o_ref.dtype)


def _matmul_bias_kernel(x_ref, w_ref, b_ref, o_ref, acc_ref):
    @pl.when(pl.program_id(2) == 0)
    def _():
        acc_ref[...] = jnp.zeros_like(acc_ref)

    acc_ref[...] += jnp.dot(x_ref[...].astype(jnp.bfloat16), w_ref[...],
                            preferred_element_type=jnp.float32)

    @pl.when(pl.program_id(2) == pl.num_programs(2) - 1)
    def _():
        o_ref[...] = (acc_ref[...] + b_ref[...]).astype(o_ref.dtype)


def _matmul_res_kernel(x_ref, w_ref, r_ref, o_ref, acc_ref):
    # Residual add fused into the epilogue (saves a full (M, N) HBM pass).
    @pl.when(pl.program_id(2) == 0)
    def _():
        acc_ref[...] = jnp.zeros_like(acc_ref)

    acc_ref[...] += jnp.dot(x_ref[...].astype(jnp.bfloat16), w_ref[...],
                            preferred_element_type=jnp.float32)

    @pl.when(pl.program_id(2) == pl.num_programs(2) - 1)
    def _():
        o_ref[...] = (acc_ref[...] + r_ref[...].astype(jnp.float32)
                      ).astype(o_ref.dtype)


def _rms_linear_kernel(x_ref, nw_ref, w_ref, o_ref, xn_ref, *, eps):
    # Fused RMSNorm (f32 math) + projection. The normalized block is computed
    # once per row block (j == 0) and cached in VMEM scratch for every N tile.
    @pl.when(pl.program_id(1) == 0)
    def _():
        x = x_ref[...].astype(jnp.float32)
        xn = x * lax.rsqrt(jnp.mean(x * x, axis=-1, keepdims=True) + eps)
        xn_ref[...] = (xn * nw_ref[...]).astype(jnp.bfloat16)

    o_ref[...] = jnp.dot(xn_ref[...], w_ref[...],
                         preferred_element_type=jnp.float32).astype(o_ref.dtype)


def _ffn_kernel(x_ref, nw_ref, w1_ref, w3_ref, w2_ref, o_ref, xn_ref, acc_ref,
                *, eps):
    # Fused ffn_norm + SwiGLU + residual add; hidden dim is the reduction axis.
    j = pl.program_id(1)

    @pl.when(j == 0)
    def _():
        x = x_ref[...].astype(jnp.float32)
        xn = x * lax.rsqrt(jnp.mean(x * x, axis=-1, keepdims=True) + eps)
        xn_ref[...] = (xn * nw_ref[...]).astype(jnp.bfloat16)
        acc_ref[...] = jnp.zeros_like(acc_ref)

    xb = xn_ref[...]
    h1 = jnp.dot(xb, w1_ref[...], preferred_element_type=jnp.float32)
    h3 = jnp.dot(xb, w3_ref[...], preferred_element_type=jnp.float32)
    g = (h1 * jax.nn.sigmoid(h1) * h3).astype(jnp.bfloat16)    # SiLU*gate, f32 math
    acc_ref[...] += jnp.dot(g, w2_ref[...], preferred_element_type=jnp.float32)

    @pl.when(j == pl.num_programs(1) - 1)
    def _():
        o_ref[...] = (acc_ref[...] + x_ref[...].astype(jnp.float32)
                      ).astype(o_ref.dtype)


# ----------------------------------------------------------------------------
# Attention kernels
# ----------------------------------------------------------------------------

def _flash_attn_kernel(ind_ref, q_ref, k_ref, v_ref, cq_ref, sq_ref, ck_ref,
                       sk_ref, o_ref, qrope_ref, m_ref, l_ref, acc_ref,
                       *, scale, img_idx, dh):
    b = pl.program_id(0)
    qi = pl.program_id(2)
    ki = pl.program_id(3)
    tq = q_ref.shape[1]
    tk = k_ref.shape[1]
    half = dh // 2

    @pl.when(ki == 0)
    def _():
        m_ref[...] = jnp.full(m_ref.shape, -jnp.inf, dtype=m_ref.dtype)
        l_ref[...] = jnp.zeros_like(l_ref)
        acc_ref[...] = jnp.zeros_like(acc_ref)
        # RoPE on the q block (half-split layout), pre-scaled by 1/sqrt(dh),
        # cached across all kv blocks.
        qf = q_ref[0].astype(jnp.float32)
        qf = qf * cq_ref[...] + pltpu.roll(qf, half, axis=1) * sq_ref[...]
        qrope_ref[...] = (qf * scale).astype(jnp.bfloat16)

    # RoPE on the k block (VPU/XLU work riding under the MXU).
    kf = k_ref[0].astype(jnp.float32)
    kf = kf * ck_ref[...] + pltpu.roll(kf, half, axis=1) * sk_ref[...]

    s = lax.dot_general(qrope_ref[...], kf.astype(jnp.bfloat16),
                        (((1,), (1,)), ((), ())),
                        preferred_element_type=jnp.float32)        # (tq, tk)

    # causal + first-column + "front" mask built in-registers from iota and
    # the per-batch indicator (scalar prefetch / SMEM). No HBM mask tensor.
    row = qi * tq + lax.broadcasted_iota(jnp.int32, (tq, tk), 0)
    col = ki * tk + lax.broadcasted_iota(jnp.int32, (tq, tk), 1)
    ind = ind_ref[b]
    masked = (col > row) | ((col == 0) & (row >= 1)) | \
             ((ind > 0) & (row >= img_idx) & (col == img_idx - 1))
    s = jnp.where(masked, -1e30, s)

    # online softmax update
    m_prev = m_ref[...]                                    # (tq, 128)
    l_prev = l_ref[...]
    m_cur = jnp.max(s, axis=-1, keepdims=True)             # (tq, 1)
    m_next = jnp.maximum(m_prev, m_cur)                    # (tq, 128)
    alpha = jnp.exp(m_prev - m_next)
    p = jnp.exp(s - m_next[:, :1])                         # (tq, tk)
    m_ref[...] = m_next
    l_ref[...] = alpha * l_prev + jnp.sum(p, axis=-1, keepdims=True)
    acc_ref[...] = acc_ref[...] * alpha[:, :1] + jnp.dot(
        p.astype(jnp.bfloat16), v_ref[0], preferred_element_type=jnp.float32)

    @pl.when(ki == pl.num_programs(3) - 1)
    def _():
        # exact normalization; l > 0 because the diagonal is never masked.
        o_ref[0] = (acc_ref[...] / l_ref[:, :1]).astype(o_ref.dtype)


def _cross_attn_kernel(q_ref, k_ref, v_ref, o_ref, *, scale):
    # Cross attention (mask=None, dropout identity at inference), one head per
    # grid step; output stored lane-dense per head.
    q = q_ref[0]                                           # (Sq, Dh) bf16
    k = k_ref[0]                                           # (Sk, Dh) bf16
    s = lax.dot_general(q, k, (((1,), (1,)), ((), ())),
                        preferred_element_type=jnp.float32) * scale
    s = s - jnp.max(s, axis=-1, keepdims=True)
    p = jnp.exp(s)
    p = p / jnp.sum(p, axis=-1, keepdims=True)
    o_ref[0] = jnp.dot(p.astype(jnp.bfloat16), v_ref[0],
                       preferred_element_type=jnp.float32).astype(o_ref.dtype)


# ----------------------------------------------------------------------------
# Pallas wrappers
# ----------------------------------------------------------------------------

def linear(x, w, b=None, residual=None, out_dtype=jnp.bfloat16,
           tm=None, tn=None, tk=None):
    """x: (M, K) float, w: (K, N) bf16, optional bias (N,) f32 or residual
    (M, N) bf16 fused into the epilogue. Returns (M, N) `out_dtype`."""
    M, K = x.shape
    N = w.shape[1]
    tm = _tile(M, tm or _LIN_TM, 8)
    tn = _tile(N, tn or _LIN_TN, 128)
    tk = _tile(K, tk or _LIN_TK, 128)
    grid = (M // tm, N // tn, K // tk)
    x_spec = pl.BlockSpec((tm, tk), lambda i, j, k: (i, k))
    w_spec = pl.BlockSpec((tk, tn), lambda i, j, k: (k, j))
    o_spec = pl.BlockSpec((tm, tn), lambda i, j, k: (i, j))
    cp = pltpu.CompilerParams(
        dimension_semantics=("parallel", "parallel", "arbitrary"),
        vmem_limit_bytes=_VMEM_LIMIT)
    scratch = [pltpu.VMEM((tm, tn), jnp.float32)]
    out_shape = jax.ShapeDtypeStruct((M, N), out_dtype)

    if b is not None:
        b2 = b.reshape(1, N).astype(jnp.float32)
        return pl.pallas_call(
            _matmul_bias_kernel, out_shape=out_shape, grid=grid,
            in_specs=[x_spec, w_spec,
                      pl.BlockSpec((1, tn), lambda i, j, k: (0, j))],
            out_specs=o_spec, scratch_shapes=scratch, compiler_params=cp,
        )(x, w, b2)
    if residual is not None:
        r_spec = pl.BlockSpec((tm, tn), lambda i, j, k: (i, j))
        return pl.pallas_call(
            _matmul_res_kernel, out_shape=out_shape, grid=grid,
            in_specs=[x_spec, w_spec, r_spec],
            out_specs=o_spec, scratch_shapes=scratch, compiler_params=cp,
        )(x, w, residual)
    return pl.pallas_call(
        _matmul_kernel, out_shape=out_shape, grid=grid,
        in_specs=[x_spec, w_spec],
        out_specs=o_spec, scratch_shapes=scratch, compiler_params=cp,
    )(x, w)


def rms_linear(x, norm_w, w, eps, out_dtype=jnp.bfloat16, tm=None, tn=None):
    """Fused RMSNorm + projection: x (M, K) float, norm_w (K,), w (K, N) bf16."""
    M, K = x.shape
    N = w.shape[1]
    tm = _tile(M, tm or _LIN_TM, 8)
    tn = _tile(N, tn or _LIN_TN, 128)
    return pl.pallas_call(
        functools.partial(_rms_linear_kernel, eps=eps),
        out_shape=jax.ShapeDtypeStruct((M, N), out_dtype),
        grid=(M // tm, N // tn),
        in_specs=[pl.BlockSpec((tm, K), lambda i, j: (i, 0)),
                  pl.BlockSpec((1, K), lambda i, j: (0, 0)),
                  pl.BlockSpec((K, tn), lambda i, j: (0, j))],
        out_specs=pl.BlockSpec((tm, tn), lambda i, j: (i, j)),
        scratch_shapes=[pltpu.VMEM((tm, K), jnp.bfloat16)],
        compiler_params=pltpu.CompilerParams(
            dimension_semantics=("parallel", "arbitrary"),
            vmem_limit_bytes=_VMEM_LIMIT),
    )(x, norm_w.reshape(1, K).astype(jnp.float32), w)


def feed_forward(x, norm_w, w1, w3, w2, eps, tm=None, th=None):
    """Fused ffn_norm + SwiGLU + residual: returns x + w2(silu(w1 xn) * (w3 xn))."""
    M, D = x.shape
    Hd = w1.shape[1]
    tm = _tile(M, tm or _FFN_TM, 8)
    th = _tile(Hd, th or _FFN_TH, 128)
    return pl.pallas_call(
        functools.partial(_ffn_kernel, eps=eps),
        out_shape=jax.ShapeDtypeStruct((M, D), jnp.bfloat16),
        grid=(M // tm, Hd // th),
        in_specs=[pl.BlockSpec((tm, D), lambda i, j: (i, 0)),
                  pl.BlockSpec((1, D), lambda i, j: (0, 0)),
                  pl.BlockSpec((D, th), lambda i, j: (0, j)),
                  pl.BlockSpec((D, th), lambda i, j: (0, j)),
                  pl.BlockSpec((th, D), lambda i, j: (j, 0))],
        out_specs=pl.BlockSpec((tm, D), lambda i, j: (i, 0)),
        scratch_shapes=[pltpu.VMEM((tm, D), jnp.bfloat16),
                        pltpu.VMEM((tm, D), jnp.float32)],
        compiler_params=pltpu.CompilerParams(
            dimension_semantics=("parallel", "arbitrary"),
            vmem_limit_bytes=_VMEM_LIMIT),
    )(x, norm_w.reshape(1, D).astype(jnp.float32), w1, w3, w2)


def self_attention(qkv, rope_cos, rope_sin, indicators, image_prompt_index,
                   scale, n_heads, head_dim):
    """qkv: (B, S, 3*H*Dh) bf16, lane-dense [q|k|v] layout straight out of the
    fused RMSNorm+QKV projection; rope tables (S, Dh) f32 in half-split layout;
    indicators (B,) int32 (scalar prefetch). Returns (B, S, H*Dh) bf16."""
    B, S, _ = qkv.shape
    H, Dh = n_heads, head_dim
    tq = _tile(S, _ATTN_TQ, 8)
    tk = _tile(S, _ATTN_TK, 8)
    grid = (B, H, S // tq, S // tk)

    q_spec = pl.BlockSpec((1, tq, Dh), lambda b, h, qi, ki, ind: (b, qi, h))
    k_spec = pl.BlockSpec((1, tk, Dh), lambda b, h, qi, ki, ind: (b, ki, H + h))
    v_spec = pl.BlockSpec((1, tk, Dh), lambda b, h, qi, ki, ind: (b, ki, 2 * H + h))
    cq_spec = pl.BlockSpec((tq, Dh), lambda b, h, qi, ki, ind: (qi, 0))
    ck_spec = pl.BlockSpec((tk, Dh), lambda b, h, qi, ki, ind: (ki, 0))
    o_spec = pl.BlockSpec((1, tq, Dh), lambda b, h, qi, ki, ind: (b, qi, h))

    kernel = functools.partial(_flash_attn_kernel, scale=scale,
                               img_idx=image_prompt_index, dh=Dh)
    return pl.pallas_call(
        kernel,
        out_shape=jax.ShapeDtypeStruct((B, S, H * Dh), jnp.bfloat16),
        grid_spec=pltpu.PrefetchScalarGridSpec(
            num_scalar_prefetch=1,
            grid=grid,
            in_specs=[q_spec, k_spec, v_spec, cq_spec, cq_spec, ck_spec, ck_spec],
            out_specs=o_spec,
            scratch_shapes=[pltpu.VMEM((tq, Dh), jnp.bfloat16),   # roped q
                            pltpu.VMEM((tq, 128), jnp.float32),   # running max
                            pltpu.VMEM((tq, 128), jnp.float32),   # running sum
                            pltpu.VMEM((tq, Dh), jnp.float32)]),  # accumulator
        compiler_params=pltpu.CompilerParams(
            dimension_semantics=("parallel", "parallel", "parallel", "arbitrary"),
            vmem_limit_bytes=_VMEM_LIMIT),
    )(indicators, qkv, qkv, qkv, rope_cos, rope_sin, rope_cos, rope_sin)


def cross_attention(q, k, v, scale, n_heads):
    """q: (B, Sq, mid), k/v: (B, Sk, mid) bf16; heads sliced on the lane axis."""
    B, Sq, mid = q.shape
    Sk = k.shape[1]
    Dh = mid // n_heads
    return pl.pallas_call(
        functools.partial(_cross_attn_kernel, scale=scale),
        out_shape=jax.ShapeDtypeStruct((B, Sq, mid), jnp.bfloat16),
        grid=(B, n_heads),
        in_specs=[pl.BlockSpec((1, Sq, Dh), lambda b, h: (b, 0, h)),
                  pl.BlockSpec((1, Sk, Dh), lambda b, h: (b, 0, h)),
                  pl.BlockSpec((1, Sk, Dh), lambda b, h: (b, 0, h))],
        out_specs=pl.BlockSpec((1, Sq, Dh), lambda b, h: (b, 0, h)),
        compiler_params=pltpu.CompilerParams(
            dimension_semantics=("parallel", "parallel"),
            vmem_limit_bytes=_VMEM_LIMIT),
    )(q, k, v)


# ----------------------------------------------------------------------------
# RoPE tables / weight permutation (half-split layout)
# ----------------------------------------------------------------------------

def precompute_rope(head_dim, end, theta=10000.0):
    """cos/sin tables such that rope(x) = x*cos + roll(x, Dh/2)*sin on the
    half-split ([re..., im...]) head layout."""
    inv = 1.0 / theta ** (
        jnp.arange(0, head_dim, 2)[: head_dim // 2].astype(jnp.float32) / head_dim)
    t = jnp.arange(end, dtype=jnp.float32)
    freqs = jnp.outer(t, inv)                                   # (end, Dh/2)
    cos, sin = jnp.cos(freqs), jnp.sin(freqs)
    return (jnp.concatenate([cos, cos], axis=-1),
            jnp.concatenate([-sin, sin], axis=-1))


def _rope_permutation(n_heads, head_dim):
    # interleaved (re, im, re, im, ...) -> half-split ([re...], [im...]) per
    # head; applied once to wq/wk output columns (q.kT is permutation-invariant).
    half = jnp.concatenate([jnp.arange(0, head_dim, 2),
                            jnp.arange(1, head_dim, 2)])
    return (jnp.arange(n_heads)[:, None] * head_dim + half[None, :]).reshape(-1)


# ----------------------------------------------------------------------------
# Model forward (plain-JAX glue around the kernels)
# ----------------------------------------------------------------------------

def transformer_block(h, lp, rope_cos, rope_sin, indicators,
                      image_prompt_index, cfg):
    B, S, D = h.shape
    nH = cfg["n_heads"]
    Dh = D // nH
    x2 = h.reshape(B * S, D)
    # fused RMSNorm + QKV projection -> lane-dense [q|k|v] bf16
    qkv = rms_linear(x2, lp["attn_norm"], lp["wqkv"], cfg["norm_eps"])
    # flash attention with in-kernel RoPE and in-kernel mask
    att = self_attention(qkv.reshape(B, S, 3 * D), rope_cos, rope_sin,
                         indicators, image_prompt_index,
                         1.0 / math.sqrt(Dh), nH, Dh)           # (B, S, D) bf16
    # wo projection with fused residual add
    h1 = linear(att.reshape(B * S, D), lp["wo"], residual=x2)
    # ffn_norm + SwiGLU with fused residual add
    h2 = feed_forward(h1, lp["ffn_norm"], lp["w1"], lp["w3"], lp["w2"],
                      cfg["norm_eps"])
    return h2.reshape(B, S, D)


def cross_attention_forward(v_feats, k_feats, q_in, cp, cfg):
    # Cross_Attention.forward with mask=None (dropout identity at inference).
    B = q_in.shape[0]
    mid = cfg["cross_mid"]
    nh = cfg["cross_heads"]
    dh = mid // nh
    D = cfg["dim"]
    Sk = v_feats.shape[1]
    vv = linear(v_feats.reshape(-1, v_feats.shape[-1]), cp["wv"], b=cp["bv"])
    kk = linear(k_feats.reshape(-1, k_feats.shape[-1]), cp["wk"], b=cp["bk"])
    qq = linear(q_in.reshape(-1, q_in.shape[-1]), cp["wq"], b=cp["bq"])
    att = cross_attention(qq.reshape(B, -1, mid), kk.reshape(B, Sk, mid),
                          vv.reshape(B, Sk, mid), 1.0 / math.sqrt(dh), nh)
    out = linear(att.reshape(-1, mid), cp["wm"], b=cp["bm"])
    return out.reshape(B, -1, D)


def transformer_forward(params, cfg, tokens, start_pos, indicators,
                        image_prompt_index, text_prompt_index, prompt_len,
                        image_feats):
    B, S, D = tokens.shape
    Dh = D // cfg["n_heads"]
    rope_cos, rope_sin = precompute_rope(Dh, cfg["max_seq_len"] * 2)
    rope_cos = rope_cos[start_pos:start_pos + S]
    rope_sin = rope_sin[start_pos:start_pos + S]

    assert S > 1 and start_pos == 0  # prefill path
    # TODO(synk): single-token decode path (seqlen == 1 with KV cache) not implemented.

    ind_arr = jnp.asarray(indicators, jnp.int32)
    h = tokens.astype(jnp.bfloat16)          # bf16 residual stream (autocast analogue)

    for l in range(cfg["insert_layer"]):
        h = transformer_block(h, params["layers"][l], rope_cos, rope_sin,
                              ind_arr, image_prompt_index, cfg)

    # generate_query_prompt: AdaptiveAvgPool1d(1) over the prompt slice == mean.
    # NOTE(synk): host-side per-sample loops (static Python indices), matching
    # the reference implementation.
    prompts = []
    for i in range(B):
        start = image_prompt_index if indicators[i] > 0 else text_prompt_index
        seg = h[i, start:start + prompt_len[i]].astype(jnp.float32)
        prompts.append(jnp.mean(seg, axis=0, keepdims=True)[None])
    query_prompts = jnp.concatenate(prompts, axis=0)        # (B, 1, D) f32

    dvp = cross_attention_forward(image_feats, image_feats, query_prompts,
                                  params["cross"], cfg)     # (B, 1, D) bf16

    # replace_dvp
    new_h = []
    for i in range(B):
        if indicators[i] > 0:
            ex = jnp.concatenate(
                [h[i, :image_prompt_index - 1], dvp[i], h[i, image_prompt_index:]],
                axis=0)
        else:
            ex = h[i]
        new_h.append(ex[None])
    h = jnp.concatenate(new_h, axis=0)

    for l in range(cfg["insert_layer"], cfg["n_layers"]):
        h = transformer_block(h, params["layers"][l], rope_cos, rope_sin,
                              ind_arr, image_prompt_index, cfg)

    # final RMSNorm fused with the vocab projection (f32 output, as reference)
    return rms_linear(h[:, -1, :], params["norm"], params["output"],
                      cfg["norm_eps"], out_dtype=jnp.float32)


# ----------------------------------------------------------------------------
# Deterministic parameter init (synthetic; shapes follow the module __init__,
# clip/cross sizes shrunk for this small example). Matmul weights are stored
# as (in_features, out_features) bf16; norm weights / biases stay f32.
# wq/wk columns are permuted to the half-split RoPE layout at init.
# ----------------------------------------------------------------------------

def _ffn_hidden(dim, multiple_of):
    h = 4 * dim
    h = int(2 * h / 3)
    return multiple_of * ((h + multiple_of - 1) // multiple_of)


def init_params(key, cfg):
    state = {"k": key}

    def nxt():
        state["k"], sub = jax.random.split(state["k"])
        return sub

    def W(shape, scale=0.02):
        return jax.random.normal(nxt(), shape, jnp.float32) * scale

    def Wb(shape, scale=0.02):
        return W(shape, scale).astype(jnp.bfloat16)

    d = cfg["dim"]
    nH = cfg["n_heads"]
    dh = d // nH
    hdim = _ffn_hidden(d, cfg["multiple_of"])
    perm = _rope_permutation(nH, dh)

    params = {"layers": []}
    for _ in range(cfg["n_layers"]):
        wq, wk, wv = W((d, d)), W((d, d)), W((d, d))
        params["layers"].append(dict(
            wqkv=jnp.concatenate([wq[:, perm], wk[:, perm], wv],
                                 axis=1).astype(jnp.bfloat16),
            wo=Wb((d, d)),
            w1=Wb((d, hdim)), w3=Wb((d, hdim)), w2=Wb((hdim, d)),
            attn_norm=jnp.ones((d,), jnp.float32),
            ffn_norm=jnp.ones((d,), jnp.float32),
        ))
    params["norm"] = jnp.ones((d,), jnp.float32)
    params["output"] = Wb((d, cfg["vocab_size"]))
    cs, mid = cfg["clip_size"], cfg["cross_mid"]
    params["cross"] = dict(
        wv=Wb((cs, mid)), bv=W((mid,), 0.01),
        wk=Wb((cs, mid)), bk=W((mid,), 0.01),
        wq=Wb((d, mid)), bq=W((mid,), 0.01),
        wm=Wb((mid, d)), bm=W((d,), 0.01),
    )
    # tok_embeddings / CLIP backbone / adapter_proj / adapter_modality_embedding /
    # image_params are not used in this forward pass and are omitted.
    return params


CFG = dict(
    dim=512, n_heads=4, n_layers=4, insert_layer=2, multiple_of=256,
    norm_eps=1e-5, vocab_size=256, max_seq_len=32,
    clip_size=256, cross_mid=512, cross_heads=4,
)


if __name__ == "__main__":
    key = jax.random.PRNGKey(0)
    kp, kt, kf = jax.random.split(key, 3)
    params = init_params(kp, CFG)

    B, S = 2, 8
    tokens = jax.random.normal(kt, (B, S, CFG["dim"]), jnp.float32)   # (B,S,D) embeddings
    image_feats = jax.random.normal(kf, (B, 5, CFG["clip_size"]), jnp.float32)
    indicators = [1, 0]
    image_prompt_index = 3
    text_prompt_index = 2
    prompt_len = [2, 3]

    out = transformer_forward(params, CFG, tokens, 0, indicators,
                              image_prompt_index, text_prompt_index,
                              prompt_len, image_feats)
    jax.block_until_ready(out)
    assert out.shape == (B, CFG["vocab_size"]) and out.dtype == jnp.float32
    print("KERNEL_OK")
</pallas_src>

<mosaic_0001>
module attributes {stable_mosaic.version = 11 : i64} {
  func.func @_rms_linear_kernel(%arg0: i32, %arg1: i32, %arg2: memref<16x512xbf16, #tpu.memory_space<vmem>>, %arg3: memref<1x512xf32, #tpu.memory_space<vmem>>, %arg4: memref<512x512xbf16, #tpu.memory_space<vmem>>, %arg5: memref<16x512xbf16, #tpu.memory_space<vmem>>, %arg6: memref<16x512xbf16, #tpu.memory_space<vmem>>) attributes {dimension_semantics = [#tpu.dimension_semantics<parallel>, #tpu.dimension_semantics<arbitrary>], iteration_bounds = array<i64: 1, 3>, scalar_prefetch = 0 : i64, scratch_operands = 1 : i64, tpu.core_type = #tpu.core_type<tc>, window_params = [{transform_indices = @transform_0, window_bounds = array<i64: 16, 512>}, {pipeline_mode = #tpu.pipeline_mode<synchronous>, transform_indices = @transform_1, window_bounds = array<i64: 1, 512>}, {transform_indices = @transform_2, window_bounds = array<i64: 512, 512>}, {transform_indices = @transform_3, window_bounds = array<i64: 16, 512>}]} {
    %c0_i32 = arith.constant 0 : i32
    %0 = arith.cmpi eq, %arg1, %c0_i32 : i32
    %1 = arith.extui %0 : i1 to i32
    %c0_i32_0 = arith.constant 0 : i32
    %2 = arith.cmpi ne, %1, %c0_i32_0 : i32
    scf.if %2 {
      %c0_6 = arith.constant 0 : index
      %c0_7 = arith.constant 0 : index
      %8 = vector.load %arg2[%c0_6, %c0_7] : memref<16x512xbf16, #tpu.memory_space<vmem>>, vector<16x512xbf16>
      %9 = arith.extf %8 : vector<16x512xbf16> to vector<16x512xf32>
      %10 = arith.mulf %9, %9 : vector<16x512xf32>
      %cst_8 = arith.constant dense<0.000000e+00> : vector<16xf32>
      %11 = vector.multi_reduction <add>, %10, %cst_8 [1] : vector<16x512xf32> to vector<16xf32>
      %12 = vector.shape_cast %11 : vector<16xf32> to vector<16x1xf32>
      %cst_9 = arith.constant 5.120000e+02 : f32
      %13 = vector.broadcast %cst_9 : f32 to vector<16x1xf32>
      %14 = arith.divf %12, %13 : vector<16x1xf32>
      %cst_10 = arith.constant 9.99999974E-6 : f32
      %15 = vector.broadcast %cst_10 : f32 to vector<16x1xf32>
      %16 = arith.addf %14, %15 : vector<16x1xf32>
      %17 = math.rsqrt %16 : vector<16x1xf32>
      %18 = vector.broadcast %17 : vector<16x1xf32> to vector<16x512xf32>
      %19 = arith.mulf %9, %18 : vector<16x512xf32>
      %c0_11 = arith.constant 0 : index
      %c0_12 = arith.constant 0 : index
      %20 = vector.load %arg3[%c0_11, %c0_12] : memref<1x512xf32, #tpu.memory_space<vmem>>, vector<1x512xf32>
      %21 = vector.broadcast %20 : vector<1x512xf32> to vector<16x512xf32>
      %22 = arith.mulf %19, %21 : vector<16x512xf32>
      %23 = arith.truncf %22 : vector<16x512xf32> to vector<16x512xbf16>
      %c0_13 = arith.constant 0 : index
      %c0_14 = arith.constant 0 : index
      %24 = vector.load %arg6[%c0_13, %c0_14] : memref<16x512xbf16, #tpu.memory_space<vmem>>, vector<16x512xbf16>
      tpu.vector_store %arg6[%c0_13, %c0_14], %23 {strides = array<i32>} : memref<16x512xbf16, #tpu.memory_space<vmem>>, vector<16x512xbf16>,
    } else {
    }
    %c0 = arith.constant 0 : index
    %c0_1 = arith.constant 0 : index
    %3 = vector.load %arg6[%c0, %c0_1] : memref<16x512xbf16, #tpu.memory_space<vmem>>, vector<16x512xbf16>
    %c0_2 = arith.constant 0 : index
    %c0_3 = arith.constant 0 : index
    %4 = vector.load %arg4[%c0_2, %c0_3] : memref<512x512xbf16, #tpu.memory_space<vmem>>, vector<512x512xbf16>
    %cst = arith.constant dense<0.000000e+00> : vector<16x512xf32>
    %5 = tpu.matmul %3, %4, %cst {dimension_numbers = #tpu.dot_dimension_numbers<[1], [0], [0], [1], [0, 0, 1, 1], [], []>} : vector<16x512xbf16>, vector<512x512xbf16>, vector<16x512xf32> -> vector<16x512xf32>
    %6 = arith.truncf %5 : vector<16x512xf32> to vector<16x512xbf16>
    %c0_4 = arith.constant 0 : index
    %c0_5 = arith.constant 0 : index
    %7 = vector.load %arg5[%c0_4, %c0_5] : memref<16x512xbf16, #tpu.memory_space<vmem>>, vector<16x512xbf16>
    tpu.vector_store %arg5[%c0_4, %c0_5], %6 {strides = array<i32>} : memref<16x512xbf16, #tpu.memory_space<vmem>>, vector<16x512xbf16>,
    return
  }
  func.func @transform_0(%arg0: i32, %arg1: i32) -> (i32, i32) {
    %c0_i32 = arith.constant 0 : i32
    %c0_i32_0 = arith.constant 0 : i32
    return %arg0, %c0_i32 : i32, i32
  }
  func.func @transform_1(%arg0: i32, %arg1: i32) -> (i32, i32) {
    %c0_i32 = arith.constant 0 : i32
    %c0_i32_0 = arith.constant 0 : i32
    %c0_i32_1 = arith.constant 0 : i32
    return %c0_i32, %c0_i32_0 : i32, i32
  }
  func.func @transform_2(%arg0: i32, %arg1: i32) -> (i32, i32) {
    %c0_i32 = arith.constant 0 : i32
    %c0_i32_0 = arith.constant 0 : i32
    return %c0_i32, %arg1 : i32, i32
  }
  func.func @transform_3(%arg0: i32, %arg1: i32) -> (i32, i32) {
    %c0_i32 = arith.constant 0 : i32
    return %arg0, %arg1 : i32, i32
  }
}

</mosaic_0001>

<bundles_post_ra>
// kernel: tpu_custom_call.1
= control target key start
LH: loop header
LB: loop body
LE: loop exit
PB: predicated region body
PF: predicated region fallthrough
CT: control target
= control target key end

     0   :  { %s2466_s0 = inlined_call_operand.hbm [shape: bf16[16,512], index: 0, kind: input, shape index: {}]   ;;  %s2467_s1 = inlined_call_operand.hbm [shape: f32[1,512], index: 1, kind: input, shape index: {}]   ;;  %s2468_s2 = inlined_call_operand.hbm [shape: bf16[512,1536], index: 2, kind: input, shape index: {}]   ;;  %s2469_s3 = inlined_call_operand.hbm [shape: bf16[16,1536], index: 3, kind: output, shape index: {}]  }
   0x1   :  { %2474 = sst [smem:[#allocation14_spill]] %s2466_s0 }
   0x2   :  { %8 = vsyncpa [#allocation4], 0 }
   0x3   :  { %9 = vsyncpa [#allocation7], 0 }
   0x4   :  { %10 = vsyncpa [#allocation5], 0 }
   0x5   :  { %12 = vsyncpa [#allocation5 + $0x1], 0  ;;  %s2123_s12 = smov 0   ;;  %s2125_s13 = smov 0  }
   0x6   :  { %s2127_s14 = smov 0   ;;  %s2129_s15 = smov 0  }
   0x7   :  { %s2131_s16 = smov 0   ;;  %s2133_s17 = smov 0  }
   0x8 LB: > { %s2154_s18 = sadd.s32 4294967295, %s2091_s17   ;;  %s1463_s19 = sadd.s32 4294967294, %s2091_s17   ;;  %s2091_s17 = sphi %s2133_s17, %s18_s17   ;;  %s2087_s16 = sphi %s2131_s16, %s2495_s16   ;;  %s2083_s15 = sphi %s2129_s15, %s2494_s15   ;;  %s2079_s14 = sphi %s2127_s14, %s2493_s14   ;;  %s2075_s13 = sphi %s2125_s13, %s2492_s13   ;;  %s2071_s12 = sphi %s2123_s12, %s2491_s12  }
   0x9   : > { %s84_s20 = sadd.s32 1, %s2079_s14  ;;  %p91_p0 = scmp.ne.s32.totalorder %s2079_s14, %s2075_s13 }
   0xa   : > { %p92_p1 = scmp.eq.s32.totalorder %s2091_s17, 0  ;;  %p97_p2 = scmp.ne.s32.totalorder %s2075_s13, %s2071_s12 }
   0xb   : > { %p2470_p3 = scmp.eq.s32.totalorder %s2154_s18, 0  ;;  %p123_p4 = scmp.eq.s32.totalorder %s2154_s18, 2 }
   0xc   : > { %p2165_p5 = por %p92_p1, %p91_p0  ;;  %p129_p6 = scmp.eq.s32.totalorder %s1463_s19, 2 }
   0xd   : > { %p2171_p7 = por %p2470_p3, %p97_p2  ;;  %p2175_p8 = por %p123_p4, %p91_p0 }
   0xe   : > { %p2179_p9 = por %p129_p6, %p97_p2  ;;  %p1464_p10 = scmp.ge.s32.totalorder %s2091_s17, 1 }
   0xf   : > { %s2477_s23 = scalar_select %p2175_p8, 1, 0 }
  0x10   : > { %s2478_s24 = scalar_select %p2179_p9, 1, 0 }
  0x11   : > { %p136_p11 = scmp.lt.s32.totalorder %s2091_s17, 4  ;;  %s2093_s26 = smov [#allocation3]  }
  0x12   : > { %s152_s27 = sshll.u32 %s2093_s26, 4  ;;  %p1661_p0 = scmp.lt.s32.totalorder %s2091_s17, 3  ;;  %s153_s27 = int_to_ptr.vmem [resolvable:$true] %s152_s27 }
  0x13   : > { %p2185_p12 = pnand %p1464_p10, %p136_p11  ;;  %s2094_s29 = smov [#allocation6]  }
  0x14   : > { %s166_s30 = sshll.u32 %s2094_s29, 4  ;;  %p2200_p2 = pnand %p1661_p0, %p2165_p5  ;;  %s167_s30 = int_to_ptr.vmem [resolvable:$true] %s166_s30 }
  0x15   : > { %p1644_p13 = pneg %p2185_p12  ;;  %s1934_s5 = scalar_lea.vmem %s153_s27, 512 }
  0x16   : > { %p1935_p6 = scmp.ne.s32.totalorder %s153_s27, %s1934_s5 }
  0x17   : > { %p2194_p1 = pnand %p1644_p13, %p2470_p3  ;;  %p1942_p13 = scmp.lt.s32.totalorder %s153_s27, %s153_s27 }
  0x18   : > { %p1943_p3 = scmp.lt.s32.totalorder %s1934_s5, %s1934_s5 }
  0x19   : > { %p1925_p4 = pneg %p2194_p1 }
  0x1a   : > { %p1944_p9 = por %p1943_p3, %p1942_p13 }
  0x1b   : > { %p1937_p10 = pnand %p1935_p6, %p1925_p4 }
  0x1d   : > { %p1938_p11 = pneg %p1937_p10 }
  0x1f   : > { %p1945_p8 = pnand %p1944_p9, %p1938_p11 }
  0x21   : > { %1948 = shalt.err (!%p1945_p8)
}
  0x22   : > { %s2472_s6 = smov 256   ;;  %s2473_s7 = smov 16  }
  0x23   : > { %s2482_s0 = sld [smem:[#allocation14_spill]]  ;;  %s1960_s10 = scalar_lea.vmem %s167_s30, 64 }
  0x24   : > { %p1961_p5 = scmp.ne.s32.totalorder %s167_s30, %s1960_s10  ;;  %p1968_p9 = scmp.lt.s32.totalorder %s167_s30, %s167_s30 }
  0x25   : > { %p1969_p8 = scmp.lt.s32.totalorder %s1960_s10, %s1960_s10 }
  0x26   : > { %p1963_p0 = pnand %p1961_p5, %p1925_p4 }
  0x27   : > { %p1970_p6 = por %p1969_p8, %p1968_p9 }
  0x28   : > { %p1964_p3 = pneg %p1963_p0 }
  0x29   : > { %1647 = dma.hbm_to_vmem [thread:$0]  (!%p2194_p1), %s2482_s0, 512, %s153_s27, [#allocation4], %s2472_s6, %s2472_s6, %s2473_s7  }
  0x2a   : > { %p1971_p10 = pnand %p1970_p6, %p1964_p3 }
  0x2c   : > { %1974 = shalt.err (!%p1971_p10)
}
  0x2d   : > { %1650 = dma.hbm_to_vmem [thread:$0]  (!%p2194_p1), %s2467_s1, 64, %s167_s30, [#allocation7]  }
  0x2e   : > { %s27_s21 = sadd.s32 1, %s2087_s16  ;;  %s177_s26 = sand.u32 1, %s2091_s17  }
  0x2f   : > { %p28_p4 = scmp.ge.s32.totalorder %s27_s21, 3  ;;  %s179_s27 = sand.u32 1, %s2079_s14  }
  0x30   : > { %s1622_s29 = sshll.u32 %s2087_s16, 8  ;;  %s1468_s28 = sshll.u32 %s179_s27, 10 }
  0x31   : > { %s2497_s21 = smov (%p28_p4, %s27_s21), 0  ;;  %s187_s9 = scalar_lea.hbm %s2468_s2, %s1622_s29 }
  0x32   : > { %s81_s10 = ssub.s32 %s2087_s16, %s2497_s21  ;;  %s181_s11 = scalar_lea.vmem [#allocation8], %s1468_s28 }
  0x33   : > { %p82_p11 = scmp.eq.s32.totalorder %s81_s10, 0  ;;  %s188_s19 = sshll.u32 %s181_s11, 4  ;;  %s189_s19 = int_to_ptr.vmem [resolvable:$true] %s188_s19 }
  0x34   : > { %s178_s6 = scalar_lea.sflag [#allocation4], %s177_s26  ;;  %p1977_p1 = pneg %p2200_p2 }
  0x35   : > { %s2239_s30 = scalar_select %p82_p11, %s2079_s14, %s84_s20  }
  0x36   : > { %s1988_s7 = scalar_lea.vmem %s189_s19, 16384  ;;  %s2097_s27 = smov [#allocation8]  }
  0x37   : > { %p1989_p13 = scmp.ne.s32.totalorder %s189_s19, %s1988_s7  ;;  %s1993_s0 = sshll.u32 %s2097_s27, 4  ;;  %s1994_s0 = int_to_ptr.vmem [resolvable:$false] %s1993_s0 }
  0x38   : > { %s1995_s5 = scalar_lea.vmem %s1994_s0, 32768  ;;  %p1996_p3 = scmp.lt.s32.totalorder %s189_s19, %s1994_s0 }
  0x39   : > { %p1991_p5 = pnand %p1989_p13, %p1977_p1  ;;  %p1997_p9 = scmp.lt.s32.totalorder %s1995_s5, %s1988_s7 }
  0x3b   : > { %p1992_p0 = pneg %p1991_p5  ;;  %p1998_p8 = por %p1997_p9, %p1996_p3 }
  0x3d   : > { %p1999_p6 = pnand %p1998_p8, %p1992_p0 }
  0x3f   : > { %2002 = shalt.err (!%p1999_p6)
}
  0x40   : > { %s2098_s29 = smov 768   ;;  %s2483_s20 = smov 16  }
  0x41   : > { %s2484_s26 = smov 256   ;;  %200 = sbr.rel (%p2185_p12) target bundleno = 613 (0x265), region = 32 }
  0x42   : > { %1654 = dma.hbm_to_vmem [thread:$0]  (!%p2200_p2), %s187_s9, 16384, %s189_s19, %s178_s6, %s2098_s29, %s2484_s26, %s2483_s20  }
  0x43   : > { %p2485_p10 = scmp.eq.s32.totalorder (!%p2185_p12), %s2154_s18, 0 }
  0x46   : > { %2054 = dma.done.wait (%p2485_p10), [#allocation4], 512   ;;  %p2486_p4 = pmov %p2485_p10 }
  0x48   : > { %2056 = vsyncadd (%p2486_p4), [#allocation4], 4294966784  ;;  %p2487_p11 = pmov %p2486_p4 }
  0x49   : > { %p2488_p1 = pmov %p2486_p4 }
  0x4a   : > { %2058 = dma.done.wait (%p2487_p11), [#allocation7], 64  }
  0x4b   : > { %2060 = vsyncadd (%p2488_p1), [#allocation7], 4294967232  ;;  %s210_s0 = sand.u32 1, %s2154_s18   ;;  %s2259_s4 = sand.u32 1, %s2075_s13  }
  0x4c   : > { %s1474_s25 = sshll.u32 %s2259_s4, 10  ;;  %s211_s6 = scalar_lea.sflag [#allocation4], %s210_s0 }
  0x4d   : > { %s2262_s7 = scalar_lea.vmem [#allocation8], %s1474_s25 }
  0x4e   : > { %2062 = dma.done.wait (%p2171_p7), %s211_s6, 16384  }
  0x4f   : > { %2064 = vsyncadd (%p2171_p7), %s211_s6, 4294950912  ;;  %s1475_s28 = sshll.u32 %s2259_s4, 5  ;;  %p1476_p12 = scmp.ne.s32.totalorder %s2083_s15, 0 }
  0x50   : > { %s2269_s8 = scalar_lea.vmem [#allocation9], %s1475_s28 }
  0x51   : > { %244 = sbr.rel (%p1476_p12) target bundleno = 265 (0x109), region = 48 }
  0x56   : > { %v245_v0 = vld [vmem:[#allocation3] sm:$0xff]  ;;  %v246_v1 = vld [vmem:[#allocation3 + $0x8] sm:$0xff]  ;;  %v247_v2 = vld [vmem:[#allocation3 + $0x10] sm:$0xff]  ;;  %v292_v30 = vlaneseq }
  0x57   : > { %v249_v3 = vunpack.c.l.bf16 %v245_v0  ;;  %v250_v4 = vunpack.c.h.bf16 %v245_v0  ;;  %v251_v5 = vunpack.c.l.bf16 %v246_v1  ;;  %v252_v6 = vunpack.c.h.bf16 %v246_v1  ;;  %v248_v7 = vld [vmem:[#allocation3 + $0x18] sm:$0xff]  ;;  %v290_v38 = vld [vmem:[#allocation6] sm:$0xf] }
  0x58   : > { %v253_v8 = vunpack.c.l.bf16 %v247_v2  ;;  %v254_v9 = vunpack.c.h.bf16 %v247_v2  ;;  %v255_v10 = vunpack.c.l.bf16 %v248_v7  ;;  %v256_v14 = vunpack.c.h.bf16 %v248_v7 }
  0x59   : > { %v257_v11 = vmul.f32 %v249_v3, %v249_v3  ;;  %v258_v12 = vmul.f32 %v250_v4, %v250_v4  ;;  %v259_v13 = vmul.f32 %v251_v5, %v251_v5  ;;  %v260_v18 = vmul.f32 %v252_v6, %v252_v6 }
  0x5a   : > { %v261_v15 = vmul.f32 %v253_v8, %v253_v8  ;;  %v262_v16 = vmul.f32 %v254_v9, %v254_v9  ;;  %v263_v17 = vmul.f32 %v255_v10, %v255_v10  ;;  %v264_v22 = vmul.f32 %v256_v14, %v256_v14 }
  0x5b   : > { %v265_v19 = vadd.f32 %v258_v12, %v257_v11  ;;  %v293_v33 = vshrl.u32 %v292_v30, 7 }
  0x5c   : > { %v270_v20 = vadd.f32 %v262_v16, %v261_v15 }
  0x5d   : > { %v266_v21 = vadd.f32 %v265_v19, %v259_v13  ;;  %v294_v34 = vsub.s32 0, %v293_v33  ;;  %v298_v35 = vsub.s32 1, %v293_v33  ;;  %v302_v36 = vsub.s32 2, %v293_v33 }
  0x5e   : > { %v271_v23 = vadd.f32 %v270_v20, %v263_v17  ;;  %v306_v37 = vsub.s32 3, %v293_v33 }
  0x5f   : > { %v267_v24 = vadd.f32 %v266_v21, %v260_v18  ;;  %v295_v39 = vrot.slane %v290_v38, %v294_v34  ;;  %v299_v40 = vrot.slane %v290_v38, %v298_v35  ;;  %v303_v41 = vrot.slane %v290_v38, %v302_v36 }
  0x60   : > { %v272_v25 = vadd.f32 %v271_v23, %v264_v22  ;;  %v307_v42 = vrot.slane %v290_v38, %v306_v37 }
  0x61   : > { %268 = vadd.xlane.f32.xlu0 %v267_v24 }
  0x65   : > { %273 = vadd.xlane.f32.xlu0 %v272_v25 }
  0xea   : > { %v269_v26 = vpop.xlane.xlu0 %268 }
  0xeb   : > { %v276_v27 = vmul.f32 0.001953125, %v269_v26 }
  0xed   : > { %v278_v28 = vadd.f32 1e-05, %v276_v27 }
  0xee   : > { %v274_v29 = vpop.xlane.xlu0 %273 }
  0xef   : > { %1721 = vrsqrt.f32 %v278_v28  ;;  %v277_v31 = vmul.f32 0.001953125, %v274_v29 }
  0xf1   : > { %v279_v32 = vadd.f32 1e-05, %v277_v31 }
  0xf3   : > { %1723 = vrsqrt.f32 %v279_v32 }
  0xfc   : > { %v1722_v43 = vpop.eup %1721 }
  0xfd   : > { %v282_v44 = vmul.f32 %v1722_v43, %v249_v3  ;;  %v283_v45 = vmul.f32 %v1722_v43, %v250_v4  ;;  %v284_v46 = vmul.f32 %v1722_v43, %v251_v5  ;;  %v285_v47 = vmul.f32 %v1722_v43, %v252_v6 }
  0xff   : > { %v312_v48 = vmul.f32 %v295_v39, %v282_v44  ;;  %v313_v49 = vmul.f32 %v299_v40, %v283_v45  ;;  %v314_v50 = vmul.f32 %v303_v41, %v284_v46  ;;  %v315_v51 = vmul.f32 %v307_v42, %v285_v47 }
 0x100   : > { %v1724_v52 = vpop.eup %1723 }
 0x101   : > { %v1623_v53 = vpack.c.bf16 %v313_v49, %v312_v48  ;;  %v1624_v54 = vpack.c.bf16 %v315_v51, %v314_v50  ;;  %v286_v55 = vmul.f32 %v1724_v52, %v253_v8  ;;  %v287_v56 = vmul.f32 %v1724_v52, %v254_v9 }
 0x102   : > { %v288_v57 = vmul.f32 %v1724_v52, %v255_v10  ;;  %v289_v58 = vmul.f32 %v1724_v52, %v256_v14 }
 0x103   : > { %344 = vst [vmem:[#allocation2 + $0x10] sm:$0xff] %v1623_v53  ;;  %345 = vst [vmem:[#allocation2] sm:$0xff] %v1624_v54  ;;  %v316_v59 = vmul.f32 %v295_v39, %v286_v55  ;;  %v317_v60 = vmul.f32 %v299_v40, %v287_v56 }
 0x104   : > { %v318_v61 = vmul.f32 %v303_v41, %v288_v57  ;;  %v319_v62 = vmul.f32 %v307_v42, %v289_v58 }
 0x105   : > { %v1625_v63 = vpack.c.bf16 %v317_v60, %v316_v59 }
 0x106   : > { %v1626_v0 = vpack.c.bf16 %v319_v62, %v318_v61 }
 0x107   : > { %346 = vst [vmem:[#allocation2 + $0x18] sm:$0xff] %v1625_v63 }
 0x108   : > { %347 = vst [vmem:[#allocation2 + $0x8] sm:$0xff] %v1626_v0 }
 0x109 PF: > { %v1725_v1 = vld [vmem:[%s2262_s7 + $0xe4] ss:$16 sps:$4 sm:$0xff]   ;;  %v1729_v3 = vld [vmem:[%s2262_s7 + $0xe0] ss:$16 sps:$4 sm:$0xff]   ;;  %s1631_s18 = sshll.u32 %s2083_s15, 8  ;;  %s1357_s22 = sshll.u32 %s2269_s8, 4  ;;  %s2418_s22 = int_to_ptr.vmem [resolvable:$true] %s1357_s22 }
 0x10a   : > { %v1727_v2 = vld [vmem:[%s2262_s7 + $0x2e4] ss:$16 sps:$4 sm:$0xff]   ;;  %1140 = vmatprep.subr.bf16.mxu0 %v1725_v1  ;;  %v1730_v4 = vld [vmem:[%s2262_s7 + $0x2e0] ss:$16 sps:$4 sm:$0xff]   ;;  %s2416_s11 = scalar_lea.hbm %s2469_s3, %s1631_s18  ;;  %s1341_s15 = scalar_lea.sflag [#allocation5], %s2259_s4 }
 0x10b   : > { %1183 = vmatprep.subr.bf16.mxu1 %v1727_v2  ;;  %v1731_v5 = vld [vmem:[%s2262_s7 + $0xc4] ss:$16 sps:$4 sm:$0xff]   ;;  %1141 = vmatpush1.bf16.msra.mxu0 %v1729_v3  ;;  %v1735_v7 = vld [vmem:[%s2262_s7 + $0xc0] ss:$16 sps:$4 sm:$0xff]   ;;  %v1829_v3 = vld [vmem:[%s2262_s7 + $0xec] ss:$16 sps:$4 sm:$0xff]  }
 0x10c   : > { %1184 = vmatpush1.bf16.msra.mxu1 %v1730_v4  ;;  %v1733_v6 = vld [vmem:[%s2262_s7 + $0x2c4] ss:$16 sps:$4 sm:$0xff]   ;;  %1142 = vmatprep.subr.bf16.mxu0 %v1731_v5  ;;  %v1736_v8 = vld [vmem:[%s2262_s7 + $0x2c0] ss:$16 sps:$4 sm:$0xff]   ;;  %v1832_v4 = vld [vmem:[%s2262_s7 + $0x2ec] ss:$16 sps:$4 sm:$0xff]  }
 0x10d   : > { %1185 = vmatprep.subr.bf16.mxu1 %v1733_v6  ;;  %v1737_v9 = vld [vmem:[%s2262_s7 + $0xa4] ss:$16 sps:$4 sm:$0xff]   ;;  %v1741_v11 = vld [vmem:[%s2262_s7 + $0xa0] ss:$16 sps:$4 sm:$0xff]   ;;  %s2003_s19 = scalar_lea.vmem %s2418_s22, 512  ;;  %p2489_p2 = scmp.ne.s32.totalorder %s2477_s23, 0 }
 0x10e   : > { %v1739_v10 = vld [vmem:[%s2262_s7 + $0x2a4] ss:$16 sps:$4 sm:$0xff]   ;;  %v1742_v12 = vld [vmem:[%s2262_s7 + $0x2a0] ss:$16 sps:$4 sm:$0xff]   ;;  %p2004_p7 = scmp.ne.s32.totalorder %s2418_s22, %s2003_s19  ;;  %s2099_s27 = smov [#allocation9]  }
 0x10f   : > { %1143 = vmatpush1.bf16.msra.mxu0 %v1735_v7  ;;  %v1743_v13 = vld [vmem:[%s2262_s7 + $0x84] ss:$16 sps:$4 sm:$0xff]   ;;  %v1747_v15 = vld [vmem:[%s2262_s7 + $0x80] ss:$16 sps:$4 sm:$0xff]   ;;  %v1827_v7 = vld [vmem:[%s2262_s7 + $0xe8] ss:$16 sps:$4 sm:$0xff]  }
 0x110   : > { %1186 = vmatpush1.bf16.msra.mxu1 %v1736_v8  ;;  %1144 = vmatprep.subr.bf16.mxu0 %v1737_v9  ;;  %v1745_v14 = vld [vmem:[%s2262_s7 + $0x284] ss:$16 sps:$4 sm:$0xff]   ;;  %v1748_v16 = vld [vmem:[%s2262_s7 + $0x280] ss:$16 sps:$4 sm:$0xff]   ;;  %v1830_v8 = vld [vmem:[%s2262_s7 + $0x2e8] ss:$16 sps:$4 sm:$0xff]   ;;  %p2005_p13 = pnand %p2004_p7, %p2489_p2 }
 0x111   : > { %1187 = vmatprep.subr.bf16.mxu1 %v1739_v10  ;;  %v1749_v17 = vld [vmem:[%s2262_s7 + $0x64] ss:$16 sps:$4 sm:$0xff]   ;;  %v1753_v19 = vld [vmem:[%s2262_s7 + $0x60] ss:$16 sps:$4 sm:$0xff]   ;;  %v1835_v9 = vld [vmem:[%s2262_s7 + $0xcc] ss:$16 sps:$4 sm:$0xff]  }
 0x112   : > { %v1751_v18 = vld [vmem:[%s2262_s7 + $0x264] ss:$16 sps:$4 sm:$0xff]   ;;  %v1754_v20 = vld [vmem:[%s2262_s7 + $0x260] ss:$16 sps:$4 sm:$0xff]   ;;  %v1838_v10 = vld [vmem:[%s2262_s7 + $0x2cc] ss:$16 sps:$4 sm:$0xff]   ;;  %p2006_p5 = pneg %p2005_p13 }
 0x113   : > { %1145 = vmatpush1.bf16.msra.mxu0 %v1741_v11  ;;  %v1755_v21 = vld [vmem:[%s2262_s7 + $0x44] ss:$16 sps:$4 sm:$0xff]   ;;  %v1759_v23 = vld [vmem:[%s2262_s7 + $0x40] ss:$16 sps:$4 sm:$0xff]   ;;  %v1833_v11 = vld [vmem:[%s2262_s7 + $0xc8] ss:$16 sps:$4 sm:$0xff]  }
 0x114   : > { %1188 = vmatpush1.bf16.msra.mxu1 %v1742_v12  ;;  %1146 = vmatprep.subr.bf16.mxu0 %v1743_v13  ;;  %v1757_v22 = vld [vmem:[%s2262_s7 + $0x244] ss:$16 sps:$4 sm:$0xff]   ;;  %v1760_v24 = vld [vmem:[%s2262_s7 + $0x240] ss:$16 sps:$4 sm:$0xff]   ;;  %v1836_v12 = vld [vmem:[%s2262_s7 + $0x2c8] ss:$16 sps:$4 sm:$0xff]  }
 0x115   : > { %1189 = vmatprep.subr.bf16.mxu1 %v1745_v14  ;;  %v1761_v25 = vld [vmem:[%s2262_s7 + $0x24] ss:$16 sps:$4 sm:$0xff]   ;;  %v1765_v27 = vld [vmem:[%s2262_s7 + $0x20] ss:$16 sps:$4 sm:$0xff]   ;;  %v1841_v13 = vld [vmem:[%s2262_s7 + $0xac] ss:$16 sps:$4 sm:$0xff]  }
 0x116   : > { %v1763_v26 = vld [vmem:[%s2262_s7 + $0x224] ss:$16 sps:$4 sm:$0xff]   ;;  %v1766_v28 = vld [vmem:[%s2262_s7 + $0x220] ss:$16 sps:$4 sm:$0xff]   ;;  %v1844_v14 = vld [vmem:[%s2262_s7 + $0x2ac] ss:$16 sps:$4 sm:$0xff]  }
 0x117   : > { %1147 = vmatpush1.bf16.msra.mxu0 %v1747_v15  ;;  %v1767_v29 = vld [vmem:[%s2262_s7 + $0x4] ss:$16 sps:$4 sm:$0xff]   ;;  %v1771_v31 = vld [vmem:[%s2262_s7] ss:$16 sps:$4 sm:$0xff]   ;;  %v1839_v15 = vld [vmem:[%s2262_s7 + $0xa8] ss:$16 sps:$4 sm:$0xff]  }
 0x118   : > { %1190 = vmatpush1.bf16.msra.mxu1 %v1748_v16  ;;  %1148 = vmatprep.subr.bf16.mxu0 %v1749_v17  ;;  %v1769_v30 = vld [vmem:[%s2262_s7 + $0x204] ss:$16 sps:$4 sm:$0xff]   ;;  %v1772_v32 = vld [vmem:[%s2262_s7 + $0x200] ss:$16 sps:$4 sm:$0xff]   ;;  %v1842_v16 = vld [vmem:[%s2262_s7 + $0x2a8] ss:$16 sps:$4 sm:$0xff]  }
 0x119   : > { %1191 = vmatprep.subr.bf16.mxu1 %v1751_v18  ;;  %v1773_v33 = vld [vmem:[%s2262_s7 + $0x1e4] ss:$16 sps:$4 sm:$0xff]   ;;  %v1777_v35 = vld [vmem:[%s2262_s7 + $0x1e0] ss:$16 sps:$4 sm:$0xff]   ;;  %v1847_v17 = vld [vmem:[%s2262_s7 + $0x8c] ss:$16 sps:$4 sm:$0xff]  }
 0x11a   : > { %v1775_v34 = vld [vmem:[%s2262_s7 + $0x3e4] ss:$16 sps:$4 sm:$0xff]   ;;  %v1778_v36 = vld [vmem:[%s2262_s7 + $0x3e0] ss:$16 sps:$4 sm:$0xff]   ;;  %v1850_v18 = vld [vmem:[%s2262_s7 + $0x28c] ss:$16 sps:$4 sm:$0xff]  }
 0x11b   : > { %1149 = vmatpush1.bf16.msra.mxu0 %v1753_v19  ;;  %v1779_v37 = vld [vmem:[%s2262_s7 + $0x1c4] ss:$16 sps:$4 sm:$0xff]   ;;  %v1783_v39 = vld [vmem:[%s2262_s7 + $0x1c0] ss:$16 sps:$4 sm:$0xff]   ;;  %v1845_v19 = vld [vmem:[%s2262_s7 + $0x88] ss:$16 sps:$4 sm:$0xff]  }
 0x11c   : > { %1192 = vmatpush1.bf16.msra.mxu1 %v1754_v20  ;;  %1150 = vmatprep.subr.bf16.mxu0 %v1755_v21  ;;  %v1781_v38 = vld [vmem:[%s2262_s7 + $0x3c4] ss:$16 sps:$4 sm:$0xff]   ;;  %v1784_v40 = vld [vmem:[%s2262_s7 + $0x3c0] ss:$16 sps:$4 sm:$0xff]   ;;  %v1848_v20 = vld [vmem:[%s2262_s7 + $0x288] ss:$16 sps:$4 sm:$0xff]  }
 0x11d   : > { %1193 = vmatprep.subr.bf16.mxu1 %v1757_v22  ;;  %v1785_v41 = vld [vmem:[%s2262_s7 + $0x1a4] ss:$16 sps:$4 sm:$0xff]   ;;  %v1789_v43 = vld [vmem:[%s2262_s7 + $0x1a0] ss:$16 sps:$4 sm:$0xff]   ;;  %v1853_v21 = vld [vmem:[%s2262_s7 + $0x6c] ss:$16 sps:$4 sm:$0xff]  }
 0x11e   : > { %v1787_v42 = vld [vmem:[%s2262_s7 + $0x3a4] ss:$16 sps:$4 sm:$0xff]   ;;  %v1790_v44 = vld [vmem:[%s2262_s7 + $0x3a0] ss:$16 sps:$4 sm:$0xff]   ;;  %v1856_v22 = vld [vmem:[%s2262_s7 + $0x26c] ss:$16 sps:$4 sm:$0xff]  }
 0x11f   : > { %1151 = vmatpush1.bf16.msra.mxu0 %v1759_v23  ;;  %v1791_v45 = vld [vmem:[%s2262_s7 + $0x184] ss:$16 sps:$4 sm:$0xff]   ;;  %v1795_v47 = vld [vmem:[%s2262_s7 + $0x180] ss:$16 sps:$4 sm:$0xff]   ;;  %v1851_v23 = vld [vmem:[%s2262_s7 + $0x68] ss:$16 sps:$4 sm:$0xff]  }
 0x120   : > { %1194 = vmatpush1.bf16.msra.mxu1 %v1760_v24  ;;  %1152 = vmatprep.subr.bf16.mxu0 %v1761_v25  ;;  %v1793_v46 = vld [vmem:[%s2262_s7 + $0x384] ss:$16 sps:$4 sm:$0xff]   ;;  %v1796_v48 = vld [vmem:[%s2262_s7 + $0x380] ss:$16 sps:$4 sm:$0xff]   ;;  %v1854_v24 = vld [vmem:[%s2262_s7 + $0x268] ss:$16 sps:$4 sm:$0xff]  }
 0x121   : > { %1195 = vmatprep.subr.bf16.mxu1 %v1763_v26  ;;  %v1797_v49 = vld [vmem:[%s2262_s7 + $0x164] ss:$16 sps:$4 sm:$0xff]   ;;  %v1823_v50 = vld [vmem:[#allocation2 + $0x14] ss:$8 sps:$4 sm:$0xff]   ;;  %v1826_v52 = vld [vmem:[#allocation2 + $0x4] ss:$8 sps:$4 sm:$0xff]  }
 0x122   : > { %v1799_v51 = vld [vmem:[%s2262_s7 + $0x364] ss:$16 sps:$4 sm:$0xff]   ;;  %1172 = vmatprep.mubr.bf16.mxu0 %v1823_v50  ;;  %v1801_v53 = vld [vmem:[%s2262_s7 + $0x160] ss:$16 sps:$4 sm:$0xff]   ;;  %1215 = vmatprep.mubr.bf16.mxu1 %v1826_v52  ;;  %v1859_v25 = vld [vmem:[%s2262_s7 + $0x4c] ss:$16 sps:$4 sm:$0xff]  }
 0x123   : > { %1153 = vmatpush1.bf16.msra.mxu0 %v1765_v27  ;;  %v1802_v54 = vld [vmem:[%s2262_s7 + $0x360] ss:$16 sps:$4 sm:$0xff]   ;;  %v1803_v55 = vld [vmem:[%s2262_s7 + $0x144] ss:$16 sps:$4 sm:$0xff]   ;;  %v1862_v26 = vld [vmem:[%s2262_s7 + $0x24c] ss:$16 sps:$4 sm:$0xff]  }
 0x124   : > { %1196 = vmatpush1.bf16.msra.mxu1 %v1766_v28  ;;  %1154 = vmatprep.subr.bf16.mxu0 %v1767_v29  ;;  %v1805_v56 = vld [vmem:[%s2262_s7 + $0x344] ss:$16 sps:$4 sm:$0xff]   ;;  %v1807_v57 = vld [vmem:[%s2262_s7 + $0x140] ss:$16 sps:$4 sm:$0xff]   ;;  %v1857_v27 = vld [vmem:[%s2262_s7 + $0x48] ss:$16 sps:$4 sm:$0xff]  }
 0x125   : > { %1197 = vmatprep.subr.bf16.mxu1 %v1769_v30  ;;  %v1808_v58 = vld [vmem:[%s2262_s7 + $0x340] ss:$16 sps:$4 sm:$0xff]   ;;  %v1809_v59 = vld [vmem:[%s2262_s7 + $0x124] ss:$16 sps:$4 sm:$0xff]   ;;  %v1860_v28 = vld [vmem:[%s2262_s7 + $0x248] ss:$16 sps:$4 sm:$0xff]  }
 0x126   : > { %v1811_v60 = vld [vmem:[%s2262_s7 + $0x324] ss:$16 sps:$4 sm:$0xff]   ;;  %v1813_v61 = vld [vmem:[%s2262_s7 + $0x120] ss:$16 sps:$4 sm:$0xff]   ;;  %v1865_v29 = vld [vmem:[%s2262_s7 + $0x2c] ss:$16 sps:$4 sm:$0xff]  }
 0x127   : > { %1155 = vmatpush1.bf16.msra.mxu0 %v1771_v31  ;;  %v1814_v62 = vld [vmem:[%s2262_s7 + $0x320] ss:$16 sps:$4 sm:$0xff]   ;;  %v1815_v63 = vld [vmem:[%s2262_s7 + $0x104] ss:$16 sps:$4 sm:$0xff]   ;;  %v1868_v30 = vld [vmem:[%s2262_s7 + $0x22c] ss:$16 sps:$4 sm:$0xff]  }
 0x128   : > { %1198 = vmatpush1.bf16.msra.mxu1 %v1772_v32  ;;  %1156 = vmatprep.subr.bf16.mxu0 %v1773_v33  ;;  %v1817_v0 = vld [vmem:[%s2262_s7 + $0x304] ss:$16 sps:$4 sm:$0xff]   ;;  %v1819_v1 = vld [vmem:[%s2262_s7 + $0x100] ss:$16 sps:$4 sm:$0xff]   ;;  %v1863_v31 = vld [vmem:[%s2262_s7 + $0x28] ss:$16 sps:$4 sm:$0xff]  }
 0x129   : > { %1199 = vmatprep.subr.bf16.mxu1 %v1775_v34  ;;  %v1820_v2 = vld [vmem:[%s2262_s7 + $0x300] ss:$16 sps:$4 sm:$0xff]   ;;  %v2338_v5 = vld [vmem:[#allocation2 + $0x10] ss:$8 sps:$4 sm:$0xff]   ;;  %v2340_v6 = vld [vmem:[#allocation2] ss:$8 sps:$4 sm:$0xff]  }
 0x12a   : > { %v1866_v32 = vld [vmem:[%s2262_s7 + $0x228] ss:$16 sps:$4 sm:$0xff]   ;;  %v1871_v33 = vld [vmem:[%s2262_s7 + $0xc] ss:$16 sps:$4 sm:$0xff]   ;;  %s2007_s5 = sshll.u32 %s2099_s27, 4  ;;  %s2008_s5 = int_to_ptr.vmem [resolvable:$false] %s2007_s5 }
 0x12b   : > { %1157 = vmatpush2.bf16.msra.mxu0 %v1777_v35  ;;  %v1874_v34 = vld [vmem:[%s2262_s7 + $0x20c] ss:$16 sps:$4 sm:$0xff]   ;;  %v1869_v35 = vld [vmem:[%s2262_s7 + $0x8] ss:$16 sps:$4 sm:$0xff]   ;;  %s2009_s29 = scalar_lea.vmem %s2008_s5, 1024  ;;  %p2010_p0 = scmp.lt.s32.totalorder %s2418_s22, %s2008_s5 }
 0x12c   : > { %1200 = vmatpush2.bf16.msra.mxu1 %v1778_v36  ;;  %1158 = vmatprep.subr.bf16.mxu0 %v1779_v37  ;;  %v1872_v36 = vld [vmem:[%s2262_s7 + $0x208] ss:$16 sps:$4 sm:$0xff]   ;;  %v1877_v37 = vld [vmem:[%s2262_s7 + $0x1ec] ss:$16 sps:$4 sm:$0xff]   ;;  %p2011_p3 = scmp.lt.s32.totalorder %s2009_s29, %s2003_s19 }
 0x12d   : > { %1201 = vmatprep.subr.bf16.mxu1 %v1781_v38  ;;  %v1880_v38 = vld [vmem:[%s2262_s7 + $0x3ec] ss:$16 sps:$4 sm:$0xff]  }
 0x12e   : > { %p2012_p9 = por %p2011_p3, %p2010_p0 }
 0x12f   : > { %1159 = vmatpush2.bf16.msra.mxu0 %v1783_v39  ;;  %v1875_v39 = vld [vmem:[%s2262_s7 + $0x1e8] ss:$16 sps:$4 sm:$0xff]  }
 0x130   : > { %1202 = vmatpush2.bf16.msra.mxu1 %v1784_v40  ;;  %1160 = vmatprep.subr.bf16.mxu0 %v1785_v41  ;;  %v1878_v40 = vld [vmem:[%s2262_s7 + $0x3e8] ss:$16 sps:$4 sm:$0xff]   ;;  %v1883_v41 = vld [vmem:[%s2262_s7 + $0x1cc] ss:$16 sps:$4 sm:$0xff]   ;;  %p2013_p8 = pnand %p2012_p9, %p2006_p5 }
 0x131   : > { %1203 = vmatprep.subr.bf16.mxu1 %v1787_v42  ;;  %v1886_v42 = vld [vmem:[%s2262_s7 + $0x3cc] ss:$16 sps:$4 sm:$0xff]  }
 0x133   : > { %1161 = vmatpush2.bf16.msra.mxu0 %v1789_v43  ;;  %v1881_v43 = vld [vmem:[%s2262_s7 + $0x1c8] ss:$16 sps:$4 sm:$0xff]  }
 0x134   : > { %1204 = vmatpush2.bf16.msra.mxu1 %v1790_v44  ;;  %1162 = vmatprep.subr.bf16.mxu0 %v1791_v45  ;;  %v1884_v44 = vld [vmem:[%s2262_s7 + $0x3c8] ss:$16 sps:$4 sm:$0xff]   ;;  %v1889_v45 = vld [vmem:[%s2262_s7 + $0x1ac] ss:$16 sps:$4 sm:$0xff]  }
 0x135   : > { %1205 = vmatprep.subr.bf16.mxu1 %v1793_v46  ;;  %v1892_v46 = vld [vmem:[%s2262_s7 + $0x3ac] ss:$16 sps:$4 sm:$0xff]  }
 0x137   : > { %1163 = vmatpush2.bf16.msra.mxu0 %v1795_v47  ;;  %v1887_v47 = vld [vmem:[%s2262_s7 + $0x1a8] ss:$16 sps:$4 sm:$0xff]  }
 0x138   : > { %1206 = vmatpush2.bf16.msra.mxu1 %v1796_v48  ;;  %1164 = vmatprep.subr.bf16.mxu0 %v1797_v49  ;;  %v1890_v48 = vld [vmem:[%s2262_s7 + $0x3a8] ss:$16 sps:$4 sm:$0xff]   ;;  %v1895_v49 = vld [vmem:[%s2262_s7 + $0x18c] ss:$16 sps:$4 sm:$0xff]  }
 0x139   : > { %1207 = vmatprep.subr.bf16.mxu1 %v1799_v51  ;;  %v1893_v51 = vld [vmem:[%s2262_s7 + $0x188] ss:$16 sps:$4 sm:$0xff]  }
 0x13b   : > { %1165 = vmatpush2.bf16.msra.mxu0 %v1801_v53  ;;  %v1901_v53 = vld [vmem:[%s2262_s7 + $0x16c] ss:$16 sps:$4 sm:$0xff]  }
 0x13c   : > { %1208 = vmatpush2.bf16.msra.mxu1 %v1802_v54  ;;  %1166 = vmatprep.subr.bf16.mxu0 %v1803_v55  ;;  %v1904_v54 = vld [vmem:[%s2262_s7 + $0x36c] ss:$16 sps:$4 sm:$0xff]   ;;  %v1899_v55 = vld [vmem:[%s2262_s7 + $0x168] ss:$16 sps:$4 sm:$0xff]  }
 0x13d   : > { %1209 = vmatprep.subr.bf16.mxu1 %v1805_v56  ;;  %v1902_v56 = vld [vmem:[%s2262_s7 + $0x368] ss:$16 sps:$4 sm:$0xff]  }
 0x13f   : > { %1167 = vmatpush2.bf16.msra.mxu0 %v1807_v57  ;;  %v1907_v57 = vld [vmem:[%s2262_s7 + $0x14c] ss:$16 sps:$4 sm:$0xff]  }
 0x140   : > { %1210 = vmatpush2.bf16.msra.mxu1 %v1808_v58  ;;  %1168 = vmatprep.subr.bf16.mxu0 %v1809_v59  ;;  %v1910_v58 = vld [vmem:[%s2262_s7 + $0x34c] ss:$16 sps:$4 sm:$0xff]   ;;  %v1905_v59 = vld [vmem:[%s2262_s7 + $0x148] ss:$16 sps:$4 sm:$0xff]  }
 0x141   : > { %1211 = vmatprep.subr.bf16.mxu1 %v1811_v60  ;;  %v1908_v60 = vld [vmem:[%s2262_s7 + $0x348] ss:$16 sps:$4 sm:$0xff]  }
 0x143   : > { %1169 = vmatpush2.bf16.msra.mxu0 %v1813_v61  ;;  %v1913_v61 = vld [vmem:[%s2262_s7 + $0x12c] ss:$16 sps:$4 sm:$0xff]  }
 0x144   : > { %1212 = vmatpush2.bf16.msra.mxu1 %v1814_v62  ;;  %1170 = vmatprep.subr.bf16.mxu0 %v1815_v63  ;;  %v1916_v62 = vld [vmem:[%s2262_s7 + $0x32c] ss:$16 sps:$4 sm:$0xff]   ;;  %v1911_v63 = vld [vmem:[%s2262_s7 + $0x128] ss:$16 sps:$4 sm:$0xff]  }
 0x145   : > { %1213 = vmatprep.subr.bf16.mxu1 %v1817_v0  ;;  %v1914_v0 = vld [vmem:[%s2262_s7 + $0x328] ss:$16 sps:$4 sm:$0xff]  }
 0x147   : > { %1171 = vmatpush2.bf16.msra.mxu0 %v1819_v1  ;;  %v1919_v1 = vld [vmem:[%s2262_s7 + $0x10c] ss:$16 sps:$4 sm:$0xff]  }
 0x148   : > { %1214 = vmatpush2.bf16.msra.mxu1 %v1820_v2  ;;  %1226 = vmatprep.subr.bf16.mxu0 %v1829_v3  ;;  %v1922_v2 = vld [vmem:[%s2262_s7 + $0x30c] ss:$16 sps:$4 sm:$0xff]   ;;  %v1917_v3 = vld [vmem:[%s2262_s7 + $0x108] ss:$16 sps:$4 sm:$0xff]  }
 0x149   : > { %1269 = vmatprep.subr.bf16.mxu1 %v1832_v4  ;;  %v1920_v4 = vld [vmem:[%s2262_s7 + $0x308] ss:$16 sps:$4 sm:$0xff]  }
 0x14a   : > { %1173 = vmatmul.mubr.bf16.vlgmr.msra.gmra.mxu0 %v2338_v5 }
 0x14b   : > { %1216 = vmatmul.mubr.bf16.vlgmr.msra.gmra.mxu1 %v2340_v6  ;;  %1227 = vmatpush1.bf16.msra.mxu0 %v1827_v7 }
 0x14c   : > { %1270 = vmatpush1.bf16.msra.mxu1 %v1830_v8  ;;  %1228 = vmatprep.subr.bf16.mxu0 %v1835_v9 }
 0x14d   : > { %1271 = vmatprep.subr.bf16.mxu1 %v1838_v10  ;;  %1258 = vmatprep.mubr.bf16.mxu0 %v1823_v50  ;;  %v1898_v50 = vld [vmem:[%s2262_s7 + $0x38c] ss:$16 sps:$4 sm:$0xff]  }
 0x14e   : > { %1301 = vmatprep.mubr.bf16.mxu1 %v1826_v52  ;;  %v1896_v52 = vld [vmem:[%s2262_s7 + $0x388] ss:$16 sps:$4 sm:$0xff]  }
 0x14f   : > { %1229 = vmatpush1.bf16.msra.mxu0 %v1833_v11 }
 0x150   : > { %1272 = vmatpush1.bf16.msra.mxu1 %v1836_v12  ;;  %1230 = vmatprep.subr.bf16.mxu0 %v1841_v13 }
 0x151   : > { %1273 = vmatprep.subr.bf16.mxu1 %v1844_v14 }
 0x153   : > { %1231 = vmatpush1.bf16.msra.mxu0 %v1839_v15 }
 0x154   : > { %1274 = vmatpush1.bf16.msra.mxu1 %v1842_v16  ;;  %1232 = vmatprep.subr.bf16.mxu0 %v1847_v17 }
 0x155   : > { %1275 = vmatprep.subr.bf16.mxu1 %v1850_v18 }
 0x157   : > { %1233 = vmatpush1.bf16.msra.mxu0 %v1845_v19 }
 0x158   : > { %1276 = vmatpush1.bf16.msra.mxu1 %v1848_v20  ;;  %1234 = vmatprep.subr.bf16.mxu0 %v1853_v21 }
 0x159   : > { %1277 = vmatprep.subr.bf16.mxu1 %v1856_v22 }
 0x15b   : > { %1235 = vmatpush1.bf16.msra.mxu0 %v1851_v23 }
 0x15c   : > { %1278 = vmatpush1.bf16.msra.mxu1 %v1854_v24  ;;  %1236 = vmatprep.subr.bf16.mxu0 %v1859_v25 }
 0x15d   : > { %1279 = vmatprep.subr.bf16.mxu1 %v1862_v26 }
 0x15f   : > { %1237 = vmatpush1.bf16.msra.mxu0 %v1857_v27 }
 0x160   : > { %1280 = vmatpush1.bf16.msra.mxu1 %v1860_v28  ;;  %1238 = vmatprep.subr.bf16.mxu0 %v1865_v29 }
 0x161   : > { %1281 = vmatprep.subr.bf16.mxu1 %v1868_v30 }
 0x163   : > { %1239 = vmatpush1.bf16.msra.mxu0 %v1863_v31 }
 0x164   : > { %1282 = vmatpush1.bf16.msra.mxu1 %v1866_v32  ;;  %1240 = vmatprep.subr.bf16.mxu0 %v1871_v33 }
 0x165   : > { %1283 = vmatprep.subr.bf16.mxu1 %v1874_v34 }
 0x167   : > { %1241 = vmatpush1.bf16.msra.mxu0 %v1869_v35 }
 0x168   : > { %1284 = vmatpush1.bf16.msra.mxu1 %v1872_v36  ;;  %1242 = vmatprep.subr.bf16.mxu0 %v1877_v37 }
 0x169   : > { %1285 = vmatprep.subr.bf16.mxu1 %v1880_v38 }
 0x16b   : > { %1243 = vmatpush2.bf16.msra.mxu0 %v1875_v39 }
 0x16c   : > { %1286 = vmatpush2.bf16.msra.mxu1 %v1878_v40  ;;  %1244 = vmatprep.subr.bf16.mxu0 %v1883_v41 }
 0x16d   : > { %1287 = vmatprep.subr.bf16.mxu1 %v1886_v42 }
 0x16f   : > { %1245 = vmatpush2.bf16.msra.mxu0 %v1881_v43 }
 0x170   : > { %1288 = vmatpush2.bf16.msra.mxu1 %v1884_v44  ;;  %1246 = vmatprep.subr.bf16.mxu0 %v1889_v45 }
 0x171   : > { %1289 = vmatprep.subr.bf16.mxu1 %v1892_v46 }
 0x173   : > { %1247 = vmatpush2.bf16.msra.mxu0 %v1887_v47 }
 0x174   : > { %1290 = vmatpush2.bf16.msra.mxu1 %v1890_v48  ;;  %1248 = vmatprep.subr.bf16.mxu0 %v1895_v49 }
 0x175   : > { %1291 = vmatprep.subr.bf16.mxu1 %v1898_v50 }
 0x177   : > { %1249 = vmatpush2.bf16.msra.mxu0 %v1893_v51 }
 0x178   : > { %1292 = vmatpush2.bf16.msra.mxu1 %v1896_v52  ;;  %1250 = vmatprep.subr.bf16.mxu0 %v1901_v53 }
 0x179   : > { %1293 = vmatprep.subr.bf16.mxu1 %v1904_v54 }
 0x17b   : > { %1251 = vmatpush2.bf16.msra.mxu0 %v1899_v55 }
 0x17c   : > { %1294 = vmatpush2.bf16.msra.mxu1 %v1902_v56  ;;  %1252 = vmatprep.subr.bf16.mxu0 %v1907_v57 }
 0x17d   : > { %1295 = vmatprep.subr.bf16.mxu1 %v1910_v58 }
 0x17f   : > { %1253 = vmatpush2.bf16.msra.mxu0 %v1905_v59 }
 0x180   : > { %1296 = vmatpush2.bf16.msra.mxu1 %v1908_v60  ;;  %1254 = vmatprep.subr.bf16.mxu0 %v1913_v61 }
 0x181   : > { %1297 = vmatprep.subr.bf16.mxu1 %v1916_v62 }
 0x183   : > { %1255 = vmatpush2.bf16.msra.mxu0 %v1911_v63 }
 0x184   : > { %1298 = vmatpush2.bf16.msra.mxu1 %v1914_v0  ;;  %1256 = vmatprep.subr.bf16.mxu0 %v1919_v1 }
 0x185   : > { %1299 = vmatprep.subr.bf16.mxu1 %v1922_v2 }
 0x187   : > { %1257 = vmatpush2.bf16.msra.mxu0 %v1917_v3 }
 0x188   : > { %1300 = vmatpush2.bf16.msra.mxu1 %v1920_v4 }
 0x18a   : > { %1259 = vmatmul.mubr.bf16.vlgmr.msra.gmra.mxu0 %v2338_v5 }
 0x18b   : > { %1302 = vmatmul.mubr.bf16.vlgmr.msra.gmra.mxu1 %v2340_v6 }
 0x20a   : > { %v1174_v7 = vpop.f32.mrf.mxu0 }
 0x20b   : > { %v1217_v8 = vpop.f32.mrf.mxu1 }
 0x20c   : > { %v1218_v9 = vadd.f32 %v1217_v8, %v1174_v7  ;;  %v1176_v10 = vpop.f32.mrf.mxu0 }
 0x20d   : > { %v1219_v11 = vpop.f32.mrf.mxu1 }
 0x20e   : > { %v1220_v12 = vadd.f32 %v1219_v11, %v1176_v10  ;;  %v1178_v13 = vpop.f32.mrf.mxu0 }
 0x20f   : > { %v1221_v14 = vpop.f32.mrf.mxu1 }
 0x210   : > { %v1627_v15 = vpack.c.bf16 %v1220_v12, %v1218_v9  ;;  %v1180_v16 = vpop.f32.mrf.mxu0  ;;  %v1222_v18 = vadd.f32 %v1221_v14, %v1178_v13 }
 0x211   : > { %v1223_v17 = vpop.f32.mrf.mxu1 }
 0x212   : > { %1336 = vst [vmem:[%s2269_s8] sm:$0xff] %v1627_v15  ;;  %v1224_v19 = vadd.f32 %v1223_v17, %v1180_v16 }
 0x214   : > { %v1629_v5 = vpack.c.bf16 %v1224_v19, %v1222_v18 }
 0x216   : > { %1338 = vst [vmem:[%s2269_s8 + $0x10] sm:$0xff] %v1629_v5 }
 0x24a   : > { %v1260_v6 = vpop.f32.mrf.mxu0 }
 0x24b   : > { %v1303_v20 = vpop.f32.mrf.mxu1 }
 0x24c   : > { %v1262_v21 = vpop.f32.mrf.mxu0  ;;  %v1304_v23 = vadd.f32 %v1303_v20, %v1260_v6 }
 0x24d   : > { %v1305_v22 = vpop.f32.mrf.mxu1 }
 0x24e   : > { %v1306_v24 = vadd.f32 %v1305_v22, %v1262_v21  ;;  %v1264_v25 = vpop.f32.mrf.mxu0 }
 0x24f   : > { %v1307_v26 = vpop.f32.mrf.mxu1 }
 0x250   : > { %v1628_v27 = vpack.c.bf16 %v1306_v24, %v1304_v23  ;;  %v1266_v28 = vpop.f32.mrf.mxu0  ;;  %v1308_v30 = vadd.f32 %v1307_v26, %v1264_v25 }
 0x251   : > { %v1309_v29 = vpop.f32.mrf.mxu1 }
 0x252   : > { %1337 = vst [vmem:[%s2269_s8 + $0x8] sm:$0xff] %v1628_v27  ;;  %v1310_v31 = vadd.f32 %v1309_v29, %v1266_v28 }
 0x254   : > { %v1630_v32 = vpack.c.bf16 %v1310_v31, %v1308_v30 }
 0x256   : > { %1339 = vst [vmem:[%s2269_s8 + $0x18] sm:$0xff] %v1630_v32 }
 0x257   : > { %2016 = shalt.err (!%p2013_p8)
}
 0x258   : > { %s2017_s20 = scalar_lea.hbm %s2416_s11, 512  ;;  %s2021_s25 = scalar_lea.hbm %s2469_s3, 1536 }
 0x259   : > { %p2018_p6 = scmp.ne.s32.totalorder %s2416_s11, %s2017_s20  ;;  %p2022_p11 = scmp.lt.s32.totalorder %s2416_s11, %s2469_s3 }
 0x25a   : > { %p2023_p1 = scmp.lt.s32.totalorder %s2021_s25, %s2017_s20 }
 0x25b   : > { %p2019_p10 = pnand %p2018_p6, %p2489_p2 }
 0x25c   : > { %p2024_p12 = por %p2023_p1, %p2022_p11 }
 0x25d   : > { %p2020_p4 = pneg %p2019_p10 }
 0x25f   : > { %p2025_p7 = pnand %p2024_p12, %p2020_p4 }
 0x261   : > { %2028 = shalt.err (!%p2025_p7)
}
 0x262   : > { %s2100_s28 = smov 256   ;;  %s2101_s8 = smov 768  }
 0x263   : > { %s2102_s18 = smov 16  }
 0x264   : > { %1642 = dma.vmem_to_hbm [thread:$0]  (%p2489_p2), %s2418_s22, 512, %s2416_s11, %s1341_s15, %s2100_s28, %s2101_s8, %s2102_s18  }
 0x265 PF: > { %p1664_p13 = scmp.ge.s32.totalorder %s2091_s17, 2  ;;  %s1372_s9 = sand.u32 1, %s2071_s12  }
 0x266   : > { %p2490_p5 = scmp.ne.s32.totalorder %s2478_s24, 0  ;;  %s1373_s10 = scalar_lea.sflag [#allocation5], %s1372_s9 }
 0x268   : > { %p1656_p0 = pnand %p1664_p13, %p2490_p5 }
 0x26a   : > { %p1657_p3 = pneg %p1656_p0 }
 0x26c   : > { %2066 = dma.done.wait (%p1657_p3), %s1373_s10, 512  }
 0x26d   : > { %2068 = vsyncadd (%p1657_p3), %s1373_s10, 4294966784  ;;  %s18_s17 = sadd.s32 1, %s2091_s17   ;;  %s2491_s12 = smov %s2075_s13 }
 0x26e   : > { %p15_p9 = scmp.ge.s32.totalorder %s18_s17, 5   ;;  %s2492_s13 = smov %s2079_s14 }
 0x26f   : > { %s2493_s14 = smov %s2239_s30  ;;  %s2494_s15 = smov %s2087_s16 }
 0x270   : > { %s2495_s16 = smov %s2497_s21  ;;  %17 = sbr.rel (!%p15_p9) target bundleno = 8 (0x8), region = 89 }
 0x275   :  { %1378 = vsyncpa [#allocation4], 1 }
 0x276   :  { %1380 = vsyncpa [#allocation4 + $0x1], 1 }
 0x277   :  { %1381 = vsyncpa [#allocation7], 1 }
 0x278   :  { %1382 = vsyncpa [#allocation5], 1 }
 0x279   :  { %1384 = vsyncpa [#allocation5 + $0x1], 1 }

</bundles_post_ra>
